<compile_context>
chip_gen: v6e
topology: v6e:2x2x1
jax: 0.10.0
libtpu: 0.0.40
codegen_flags: <defaults>
</compile_context>

<pallas_src>
import jax
import jax.numpy as jnp
from jax.experimental import pallas as pl
from jax.experimental.pallas import tpu as pltpu

STATE_DIM = 3      # Pendulum-v0 observation_space.shape[0]
ACTION_DIM = 1     # Pendulum-v0 action_space.shape[0]
H1, H2 = 64, 32
LANE = 128         # TPU lane width; batch tiles are multiples of this
MAX_TILE_B = 8192  # VMEM safety cap (keeps v5e under its 16 MiB scoped default)


def actor_kernel(x_ref, w1_ref, b1_ref, w2_ref, b2_ref, w3_ref, b3_ref, out_ref):
    # x_ref  : (STATE_DIM, TILE_B) f32   -- batch on lanes
    # w1     : (H1, STATE_DIM) f32, b1 (H1, 1) f32
    # w2     : (H2, H1) bf16,       b2 (H2, 1) f32
    # w3     : (H2, ACTION_DIM) f32 (pre-transposed column), b3 scalar in SMEM
    x = x_ref[...]
    w1 = w1_ref[...]

    # fc1 (K=3): three broadcast FMAs on the VPU instead of a >95%-padded MXU pass.
    h1 = (w1[:, 0:1] * x[0:1, :]
          + w1[:, 1:2] * x[1:2, :]
          + w1[:, 2:3] * x[2:3, :]
          + b1_ref[...])
    h1 = jnp.maximum(h1, 0.0)                                    # (H1, TILE_B) f32

    # fc2: the only real matmul -> MXU in bf16 with f32 accumulation.
    h2 = jnp.dot(w2_ref[...], h1.astype(jnp.bfloat16),
                 preferred_element_type=jnp.float32) + b2_ref[...]
    h2 = jnp.maximum(h2, 0.0)                                    # (H2, TILE_B) f32

    # fc3 (M=1, K=32): VPU multiply + sublane (XLU) reduce, scalar bias from SMEM.
    h3 = jnp.sum(w3_ref[...] * h2, axis=0, keepdims=True) + b3_ref[0, 0]
    out_ref[...] = jnp.tanh(h3)                                  # (ACTION_DIM, TILE_B)


def _actor_jnp(state, params):
    """Pure-JAX path (small batches / reference math), f32, highest precision."""
    hi = jax.lax.Precision.HIGHEST
    x = jnp.maximum(jnp.matmul(state, params["w1"].T, precision=hi) + params["b1"].T, 0.0)
    x = jnp.maximum(jnp.matmul(x, params["w2"].T, precision=hi) + params["b2"].T, 0.0)
    return jnp.tanh(jnp.matmul(x, params["w3"].T, precision=hi) + params["b3"].T)


def actor_forward(state, params, tile_b=2048, min_pallas_batch=512):
    """state: (B, STATE_DIM) f32 -> (B, ACTION_DIM) f32.

    params: w1 (64,3), b1 (64,1), w2 (32,64), b2 (32,1), w3 (1,32), b3 (1,1),
            all f32, feature-major (out, in).
    """
    B = state.shape[0]

    # DDPG action selection (B=1..2): pad/transpose + pallas_call dispatch is
    # pure overhead versus nanoseconds of math -> let XLA's dense path run it.
    if B < min_pallas_batch:
        return _actor_jnp(state, params)

    # Batch tile: as large as practical (per-grid-step overhead dominates at
    # small tiles), capped for v5e VMEM, but never so large that the grid has
    # fewer than 2 steps (so v7x's 2 TensorCores both get work; the extra
    # ~0.35 us step is negligible on single-TC v5e/v6e).
    tile_b = max(LANE, (min(int(tile_b), MAX_TILE_B) // LANE) * LANE)
    half_b = pl.cdiv(pl.cdiv(B, 2), LANE) * LANE
    tile_b = min(tile_b, max(LANE, half_b))
    b_padded = pl.cdiv(B, tile_b) * tile_b

    # Single fused pad + transpose to feature-major (batch on the lane axis).
    x_t = jnp.pad(state.astype(jnp.float32), ((0, b_padded - B), (0, 0))).T

    grid = (b_padded // tile_b,)

    out_t = pl.pallas_call(
        actor_kernel,
        out_shape=jax.ShapeDtypeStruct((ACTION_DIM, b_padded), jnp.float32),
        grid=grid,
        in_specs=[
            # streamed: one batch tile per grid step (double-buffered by Pallas)
            pl.BlockSpec((STATE_DIM, tile_b), lambda i: (0, i)),
            # resident params: constant index_map -> fetched once, stay in VMEM
            pl.BlockSpec((H1, STATE_DIM), lambda i: (0, 0)),
            pl.BlockSpec((H1, 1), lambda i: (0, 0)),
            pl.BlockSpec((H2, H1), lambda i: (0, 0)),
            pl.BlockSpec((H2, 1), lambda i: (0, 0)),
            pl.BlockSpec((H2, ACTION_DIM), lambda i: (0, 0)),
            # scalar fc3 bias lives in SMEM (no lane-padded VMEM tile for it)
            pl.BlockSpec(memory_space=pltpu.MemorySpace.SMEM),
        ],
        out_specs=pl.BlockSpec((ACTION_DIM, tile_b), lambda i: (0, i)),
        compiler_params=pltpu.CompilerParams(
            dimension_semantics=("parallel",),   # v7x: 2 TCs split the batch grid
        ),
    )(
        x_t,
        params["w1"], params["b1"],
        params["w2"].astype(jnp.bfloat16), params["b2"],
        params["w3"].T,                 # (H2, ACTION_DIM) column layout
        params["b3"],
    )

    # Drop padding, back to (B, ACTION_DIM) to match the PyTorch module.
    return out_t[:, :B].T


def init_params(key):
    """Mimics nn.Linear's U(-1/sqrt(fan_in), 1/sqrt(fan_in)); (out, in) layout."""
    def linear(key, fan_in, fan_out):
        kw, kb = jax.random.split(key)
        bound = 1.0 / jnp.sqrt(fan_in)
        w = jax.random.uniform(kw, (fan_out, fan_in), jnp.float32, -bound, bound)
        b = jax.random.uniform(kb, (fan_out, 1), jnp.float32, -bound, bound)
        return w, b

    k1, k2, k3 = jax.random.split(key, 3)
    w1, b1 = linear(k1, STATE_DIM, H1)
    w2, b2 = linear(k2, H1, H2)
    w3, b3 = linear(k3, H2, ACTION_DIM)
    return {"w1": w1, "b1": b1, "w2": w2, "b2": b2, "w3": w3, "b3": b3}


def actor_reference(state, params):
    """Pure-JAX reference of the PyTorch forward (f32, highest precision)."""
    return _actor_jnp(state, params)


if __name__ == "__main__":
    key = jax.random.PRNGKey(0)
    k_params, k_state1, k_state2 = jax.random.split(key, 3)

    params = init_params(k_params)

    # 1) Tiny action-selection batch -> jnp fast path (default dispatch).
    state_small = jax.random.normal(k_state1, (2, STATE_DIM), jnp.float32)
    out_small = jax.block_until_ready(actor_forward(state_small, params))
    ref_small = actor_reference(state_small, params)
    assert out_small.shape == (2, ACTION_DIM)
    assert jnp.allclose(out_small, ref_small, atol=1e-5, rtol=1e-5)

    # 2) Same tiny batch forced through the Pallas kernel (single padded tile).
    out_small_pk = jax.block_until_ready(
        actor_forward(state_small, params, min_pallas_batch=0))
    assert out_small_pk.shape == (2, ACTION_DIM)
    assert jnp.allclose(out_small_pk, ref_small, atol=2e-2, rtol=2e-2)

    # 3) Ragged multi-tile batch through the Pallas kernel (>=2 grid steps).
    state_big = jax.random.normal(k_state2, (300, STATE_DIM), jnp.float32)
    out_big = jax.block_until_ready(
        actor_forward(state_big, params, tile_b=2048, min_pallas_batch=0))
    ref_big = actor_reference(state_big, params)
    assert out_big.shape == (300, ACTION_DIM)
    assert jnp.allclose(out_big, ref_big, atol=2e-2, rtol=2e-2)

    print("KERNEL_OK")
</pallas_src>

<mosaic_0001>
module attributes {stable_mosaic.version = 11 : i64} {
  func.func @actor_kernel(%arg0: i32, %arg1: memref<3x128xf32, #tpu.memory_space<vmem>>, %arg2: memref<64x3xf32, #tpu.memory_space<vmem>>, %arg3: memref<64x1xf32, #tpu.memory_space<vmem>>, %arg4: memref<32x64xbf16, #tpu.memory_space<vmem>>, %arg5: memref<32x1xf32, #tpu.memory_space<vmem>>, %arg6: memref<32x1xf32, #tpu.memory_space<vmem>>, %arg7: memref<1x1xf32, #tpu.memory_space<smem>>, %arg8: memref<1x128xf32, #tpu.memory_space<vmem>>) attributes {dimension_semantics = [#tpu.dimension_semantics<parallel>], iteration_bounds = array<i64: 1>, scalar_prefetch = 0 : i64, scratch_operands = 0 : i64, tpu.core_type = #tpu.core_type<tc>, window_params = [{transform_indices = @transform_0, window_bounds = array<i64: 3, 128>}, {pipeline_mode = #tpu.pipeline_mode<synchronous>, transform_indices = @transform_1, window_bounds = array<i64: 64, 3>}, {pipeline_mode = #tpu.pipeline_mode<synchronous>, transform_indices = @transform_2, window_bounds = array<i64: 64, 1>}, {pipeline_mode = #tpu.pipeline_mode<synchronous>, transform_indices = @transform_3, window_bounds = array<i64: 32, 64>}, {pipeline_mode = #tpu.pipeline_mode<synchronous>, transform_indices = @transform_4, window_bounds = array<i64: 32, 1>}, {pipeline_mode = #tpu.pipeline_mode<synchronous>, transform_indices = @transform_5, window_bounds = array<i64: 32, 1>}, {transform_indices = @transform_6, window_bounds = array<i64: 1, 1>}, {transform_indices = @transform_7, window_bounds = array<i64: 1, 128>}]} {
    %c0 = arith.constant 0 : index
    %c0_0 = arith.constant 0 : index
    %0 = vector.load %arg1[%c0, %c0_0] : memref<3x128xf32, #tpu.memory_space<vmem>>, vector<3x128xf32>
    %c0_1 = arith.constant 0 : index
    %c0_2 = arith.constant 0 : index
    %1 = vector.load %arg2[%c0_1, %c0_2] : memref<64x3xf32, #tpu.memory_space<vmem>>, vector<64x3xf32>
    %2 = vector.extract_strided_slice %1 {offsets = [0, 0], sizes = [64, 1], strides = [1, 1]} : vector<64x3xf32> to vector<64x1xf32>
    %3 = vector.extract_strided_slice %0 {offsets = [0, 0], sizes = [1, 128], strides = [1, 1]} : vector<3x128xf32> to vector<1x128xf32>
    %4 = vector.broadcast %2 : vector<64x1xf32> to vector<64x128xf32>
    %5 = vector.broadcast %3 : vector<1x128xf32> to vector<64x128xf32>
    %6 = arith.mulf %4, %5 : vector<64x128xf32>
    %7 = vector.extract_strided_slice %1 {offsets = [0, 1], sizes = [64, 1], strides = [1, 1]} : vector<64x3xf32> to vector<64x1xf32>
    %8 = vector.extract_strided_slice %0 {offsets = [1, 0], sizes = [1, 128], strides = [1, 1]} : vector<3x128xf32> to vector<1x128xf32>
    %9 = vector.broadcast %7 : vector<64x1xf32> to vector<64x128xf32>
    %10 = vector.broadcast %8 : vector<1x128xf32> to vector<64x128xf32>
    %11 = arith.mulf %9, %10 : vector<64x128xf32>
    %12 = arith.addf %6, %11 : vector<64x128xf32>
    %13 = vector.extract_strided_slice %1 {offsets = [0, 2], sizes = [64, 1], strides = [1, 1]} : vector<64x3xf32> to vector<64x1xf32>
    %14 = vector.extract_strided_slice %0 {offsets = [2, 0], sizes = [1, 128], strides = [1, 1]} : vector<3x128xf32> to vector<1x128xf32>
    %15 = vector.broadcast %13 : vector<64x1xf32> to vector<64x128xf32>
    %16 = vector.broadcast %14 : vector<1x128xf32> to vector<64x128xf32>
    %17 = arith.mulf %15, %16 : vector<64x128xf32>
    %18 = arith.addf %12, %17 : vector<64x128xf32>
    %c0_3 = arith.constant 0 : index
    %c0_4 = arith.constant 0 : index
    %19 = vector.load %arg3[%c0_3, %c0_4] : memref<64x1xf32, #tpu.memory_space<vmem>>, vector<64x1xf32>
    %20 = vector.broadcast %19 : vector<64x1xf32> to vector<64x128xf32>
    %21 = arith.addf %18, %20 : vector<64x128xf32>
    %cst = arith.constant 0.000000e+00 : f32
    %22 = vector.broadcast %cst : f32 to vector<64x128xf32>
    %23 = arith.maximumf %21, %22 : vector<64x128xf32>
    %c0_5 = arith.constant 0 : index
    %c0_6 = arith.constant 0 : index
    %24 = vector.load %arg4[%c0_5, %c0_6] : memref<32x64xbf16, #tpu.memory_space<vmem>>, vector<32x64xbf16>
    %25 = arith.truncf %23 : vector<64x128xf32> to vector<64x128xbf16>
    %cst_7 = arith.constant dense<0.000000e+00> : vector<32x128xf32>
    %26 = tpu.matmul %24, %25, %cst_7 {dimension_numbers = #tpu.dot_dimension_numbers<[1], [0], [0], [1], [0, 0, 1, 1], [], []>} : vector<32x64xbf16>, vector<64x128xbf16>, vector<32x128xf32> -> vector<32x128xf32>
    %c0_8 = arith.constant 0 : index
    %c0_9 = arith.constant 0 : index
    %27 = vector.load %arg5[%c0_8, %c0_9] : memref<32x1xf32, #tpu.memory_space<vmem>>, vector<32x1xf32>
    %28 = vector.broadcast %27 : vector<32x1xf32> to vector<32x128xf32>
    %29 = arith.addf %26, %28 : vector<32x128xf32>
    %cst_10 = arith.constant 0.000000e+00 : f32
    %30 = vector.broadcast %cst_10 : f32 to vector<32x128xf32>
    %31 = arith.maximumf %29, %30 : vector<32x128xf32>
    %c0_11 = arith.constant 0 : index
    %c0_12 = arith.constant 0 : index
    %32 = vector.load %arg6[%c0_11, %c0_12] : memref<32x1xf32, #tpu.memory_space<vmem>>, vector<32x1xf32>
    %33 = vector.broadcast %32 : vector<32x1xf32> to vector<32x128xf32>
    %34 = arith.mulf %33, %31 : vector<32x128xf32>
    %cst_13 = arith.constant dense<0.000000e+00> : vector<128xf32>
    %35 = vector.multi_reduction <add>, %34, %cst_13 [0] : vector<32x128xf32> to vector<128xf32>
    %36 = vector.shape_cast %35 : vector<128xf32> to vector<1x128xf32>
    %c0_14 = arith.constant 0 : index
    %c0_15 = arith.constant 0 : index
    %37 = memref.load %arg7[%c0_14, %c0_15] : memref<1x1xf32, #tpu.memory_space<smem>>
    %38 = vector.broadcast %37 : f32 to vector<1x128xf32>
    %39 = arith.addf %36, %38 : vector<1x128xf32>
    %40 = math.tanh %39 : vector<1x128xf32>
    %c0_16 = arith.constant 0 : index
    %c0_17 = arith.constant 0 : index
    %41 = vector.load %arg8[%c0_16, %c0_17] : memref<1x128xf32, #tpu.memory_space<vmem>>, vector<1x128xf32>
    tpu.vector_store %arg8[%c0_16, %c0_17], %40 {strides = array<i32>} : memref<1x128xf32, #tpu.memory_space<vmem>>, vector<1x128xf32>,
    return
  }
  func.func @transform_0(%arg0: i32) -> (i32, i32) {
    %c0_i32 = arith.constant 0 : i32
    %c0_i32_0 = arith.constant 0 : i32
    return %c0_i32, %arg0 : i32, i32
  }
  func.func @transform_1(%arg0: i32) -> (i32, i32) {
    %c0_i32 = arith.constant 0 : i32
    %c0_i32_0 = arith.constant 0 : i32
    %c0_i32_1 = arith.constant 0 : i32
    return %c0_i32, %c0_i32_0 : i32, i32
  }
  func.func @transform_2(%arg0: i32) -> (i32, i32) {
    %c0_i32 = arith.constant 0 : i32
    %c0_i32_0 = arith.constant 0 : i32
    %c0_i32_1 = arith.constant 0 : i32
    return %c0_i32, %c0_i32_0 : i32, i32
  }
  func.func @transform_3(%arg0: i32) -> (i32, i32) {
    %c0_i32 = arith.constant 0 : i32
    %c0_i32_0 = arith.constant 0 : i32
    %c0_i32_1 = arith.constant 0 : i32
    return %c0_i32, %c0_i32_0 : i32, i32
  }
  func.func @transform_4(%arg0: i32) -> (i32, i32) {
    %c0_i32 = arith.constant 0 : i32
    %c0_i32_0 = arith.constant 0 : i32
    %c0_i32_1 = arith.constant 0 : i32
    return %c0_i32, %c0_i32_0 : i32, i32
  }
  func.func @transform_5(%arg0: i32) -> (i32, i32) {
    %c0_i32 = arith.constant 0 : i32
    %c0_i32_0 = arith.constant 0 : i32
    %c0_i32_1 = arith.constant 0 : i32
    return %c0_i32, %c0_i32_0 : i32, i32
  }
  func.func @transform_6(%arg0: i32) -> (i32, i32) {
    %c0_i32 = arith.constant 0 : i32
    %c0_i32_0 = arith.constant 0 : i32
    %c0_i32_1 = arith.constant 0 : i32
    return %c0_i32, %c0_i32_0 : i32, i32
  }
  func.func @transform_7(%arg0: i32) -> (i32, i32) {
    %c0_i32 = arith.constant 0 : i32
    %c0_i32_0 = arith.constant 0 : i32
    return %c0_i32, %arg0 : i32, i32
  }
}

</mosaic_0001>

<bundles_post_ra>
// kernel: tpu_custom_call.1
= control target key start
LH: loop header
LB: loop body
LE: loop exit
PB: predicated region body
PF: predicated region fallthrough
CT: control target
= control target key end

     0   :  { %v483_v1 = vmov 2   ;;  %v484_v2 = vmov 1   ;;  %s657_s0 = inlined_call_operand.vmem [shape: f32[3,128], index: 0, kind: input, shape index: {}]   ;;  %s658_s1 = inlined_call_operand.vmem [shape: f32[64,3], index: 1, kind: input, shape index: {}]   ;;  %s659_s2 = inlined_call_operand.vmem [shape: f32[64,1], index: 2, kind: input, shape index: {}]   ;;  %s660_s3 = inlined_call_operand.vmem [shape: bf16[32,64], index: 3, kind: input, shape index: {}]   ;;  %s661_s4 = inlined_call_operand.vmem [shape: f32[32,1], index: 4, kind: input, shape index: {}]   ;;  %s662_s5 = inlined_call_operand.vmem [shape: f32[32,1], index: 5, kind: input, shape index: {}]   ;;  %s663_s6 = inlined_call_operand.<no memory space> [shape: f32[1,1], index: 6, kind: input, shape index: {}]   ;;  %s664_s7 = inlined_call_operand.hbm [shape: f32[1,128], index: 7, kind: output, shape index: {}]  }
   0x1   :  { %v36_v0 = vld [vmem:[%s658_s1 + $0x30] sm:$0xff]  ;;  %443 = vset.pattern.permute.xlu0 %v483_v1  ;;  %442 = vset.pattern.permute.xlu1 %v484_v2  ;;  %v37_v3 = vld [vmem:[%s658_s1 + $0x38] sm:$0xff]  ;;  %v34_v4 = vld [vmem:[%s658_s1 + $0x20] sm:$0xff] }
   0x2   :  { %167 = vperm.xlu0 %443, %v36_v0   ;;  %115 = vperm.xlu1 %442, %v36_v0   ;;  %v33_v5 = vld [vmem:[%s658_s1 + $0x18] sm:$0xff] }
   0x6   :  { %119 = vperm.xlu1 %442, %v37_v3   ;;  %159 = vperm.xlu0 %443, %v34_v4  }
   0x7   :  { %13 = vsyncpa [#allocation4], 0  ;;  %v32_v6 = vld [vmem:[%s658_s1 + $0x10] sm:$0xff]  ;;  %v485_v7 = vmov 0   ;;  %v31_v8 = vld [vmem:[%s658_s1 + $0x8] sm:$0xff]  ;;  %vm300_vm0 = vcmask 523264   ;;  %v78_v34 = vlaneseq }
   0x8   :  { %v35_v9 = vld [vmem:[%s658_s1 + $0x28] sm:$0xff]  ;;  %v200_v10 = vld [vmem:[%s659_s2 + $0x30] sm:$0xff]  ;;  %v201_v11 = vld [vmem:[%s659_s2 + $0x38] sm:$0xff]  ;;  %s486_s27 = smov [#allocation3]  }
   0x9   :  { %v30_v12 = vld [vmem:[%s658_s1] sm:$0xff]  ;;  %v196_v13 = vld [vmem:[%s659_s2 + $0x10] sm:$0xff]  ;;  %v195_v14 = vld [vmem:[%s659_s2 + $0x8] sm:$0xff]  ;;  %v79_v36 = vshrl.u32 %v78_v34, 7  ;;  %s408_s28 = sshll.u32 %s486_s27, 4  ;;  %s409_s28 = int_to_ptr.vmem [resolvable:$true] %s408_s28 }
   0xa   :  { %444 = vset.pattern.permute.xlu1 %v483_v1  ;;  %155 = vperm.xlu0 %443, %v33_v5   ;;  %v267_v15 = vld [vmem:[%s661_s4 + $0x8] sm:$0xff]  ;;  %v269_v16 = vld [vmem:[%s661_s4 + $0x18] sm:$0xff]  ;;  %v198_v17 = vld [vmem:[%s659_s2 + $0x20] sm:$0xff]  ;;  %s461_s29 = scalar_lea.vmem %s409_s28, 16  ;;  %s465_s30 = scalar_lea.vmem %s409_s28, 32 }
   0xb   :  { %171 = vperm.xlu1 %444, %v37_v3   ;;  %v361_v18 = vld [vmem:[%s662_s5 + $0x8] sm:$0xff]  ;;  %v363_v20 = vld [vmem:[%s662_s5 + $0x18] sm:$0xff]  ;;  %v194_v22 = vld [vmem:[%s659_s2] sm:$0xff]  ;;  %v124_v39 = vsub.s32 1, %v79_v36  ;;  %v80_v40 = vsub.s32 0, %v79_v36  ;;  %v176_v44 = vsub.s32 2, %v79_v36  ;;  %p462_p0 = scmp.ne.s32.totalorder %s409_s28, %s461_s29  ;;  %p466_p1 = scmp.lt.s32.totalorder %s409_s28, %s409_s28 }
   0xc   :  { %v199_v19 = vld [vmem:[%s659_s2 + $0x28] sm:$0xff]  ;;  %v197_v21 = vld [vmem:[%s659_s2 + $0x18] sm:$0xff]  ;;  %v266_v23 = vld [vmem:[%s661_s4] sm:$0xff]  ;;  %p467_p2 = scmp.lt.s32.totalorder %s465_s30, %s461_s29 }
   0xd   :  { %v457_v24 = vld [vmem:[%s660_s3] sm:$0xff]   ;;  %v268_v25 = vld [vmem:[%s661_s4 + $0x10] sm:$0xff] }
   0xe   :  { %451 = vset.pattern.permute.xlu0 %v484_v2  ;;  %434 = vmatprep.mubr.msk.bf16.mxu0 %vm300_vm0, %v457_v24  ;;  %v360_v26 = vld [vmem:[%s662_s5] sm:$0xff]  ;;  %v362_v27 = vld [vmem:[%s662_s5 + $0x10] sm:$0xff]  ;;  %p468_p3 = por %p467_p2, %p466_p1 }
   0xf   :  { %445 = vset.pattern.permute.xlu1 %v485_v7  ;;  %99 = vperm.xlu0 %451, %v32_v6   ;;  %v29_v41 = vld [vmem:[%s657_s0] sm:$0x7] }
  0x10   :  { %60 = vperm.xlu1 %445, %v34_v4   ;;  %v615_v43 = vrot.slane %v29_v41, %v124_v39  ;;  %v617_v45 = vrot.slane %v29_v41, %v80_v40  ;;  %v621_v50 = vrot.slane %v29_v41, %v176_v44  ;;  %p469_p4 = pnand %p468_p3, %p462_p0 }
  0x13   :  { %95 = vperm.xlu0 %451, %v31_v8  }
  0x14   :  { %446 = vset.pattern.permute.xlu1 %v484_v2 }
  0x15   :  { %107 = vperm.xlu1 %446, %v34_v4  }
  0x17   :  { %454 = vset.pattern.permute.xlu0 %v485_v7 }
  0x18   :  { %70 = vperm.xlu0 %454, %v36_v0  }
  0x19   :  { %111 = vperm.xlu1 %446, %v35_v9  }
  0x1c   :  { %75 = vperm.xlu0 %454, %v37_v3  }
  0x1d   :  { %447 = vset.pattern.permute.xlu1 %v483_v1 }
  0x1e   :  { %163 = vperm.xlu1 %447, %v35_v9  }
  0x20   :  { %65 = vperm.xlu0 %454, %v35_v9  }
  0x22   :  { %448 = vset.pattern.permute.xlu1 %v485_v7 }
  0x23   :  { %234 = vperm.xlu1 %448, %v200_v10  }
  0x24   :  { %239 = vperm.xlu0 %454, %v201_v11  }
  0x27   :  { %50 = vperm.xlu1 %448, %v32_v6  }
  0x28   :  { %40 = vperm.xlu0 %454, %v30_v12  }
  0x2b   :  { %55 = vperm.xlu1 %448, %v33_v5  }
  0x2c   :  { %214 = vperm.xlu0 %454, %v196_v13  }
  0x2f   :  { %449 = vset.pattern.permute.xlu1 %v484_v2 }
  0x30   :  { %103 = vperm.xlu1 %449, %v33_v5   ;;  %209 = vperm.xlu0 %454, %v195_v14  }
  0x34   :  { %450 = vset.pattern.permute.xlu1 %v483_v1  ;;  %277 = vperm.xlu0 %454, %v267_v15  }
  0x35   :  { %151 = vperm.xlu1 %450, %v32_v6  }
  0x38   :  { %287 = vperm.xlu0 %454, %v269_v16  }
  0x39   :  { %452 = vset.pattern.permute.xlu1 %v485_v7 }
  0x3a   :  { %224 = vperm.xlu1 %452, %v198_v17  }
  0x3c   :  { %371 = vperm.xlu0 %454, %v361_v18  }
  0x3e   :  { %229 = vperm.xlu1 %452, %v199_v19  }
  0x40   :  { %381 = vperm.xlu0 %454, %v363_v20  }
  0x42   :  { %45 = vperm.xlu1 %452, %v31_v8  }
  0x46   :  { %453 = vset.pattern.permute.xlu1 %v484_v2 }
  0x47   :  { %91 = vperm.xlu1 %453, %v30_v12  }
  0x4b   :  { %455 = vset.pattern.permute.xlu1 %v483_v1 }
  0x4c   :  { %143 = vperm.xlu1 %455, %v30_v12  }
  0x50   :  { %147 = vperm.xlu1 %455, %v31_v8  }
  0x54   :  { %456 = vset.pattern.permute.xlu1 %v485_v7 }
  0x55   :  { %219 = vperm.xlu1 %456, %v197_v21  }
  0x59   :  { %204 = vperm.xlu1 %456, %v194_v22  }
  0x5d   :  { %272 = vperm.xlu1 %456, %v266_v23  }
  0x61   :  { %282 = vperm.xlu1 %456, %v268_v25  }
  0x65   :  { %366 = vperm.xlu1 %456, %v360_v26  }
  0x69   :  { %376 = vperm.xlu1 %456, %v362_v27  }
  0x7d   :  { %v116_v28 = vpop.permute.xlu1 %115  ;;  %v168_v29 = vpop.permute.xlu0 %167 }
  0x7e   :  { %v132_v49 = vmul.f32 %v615_v43, %v116_v28  ;;  %v184_v54 = vmul.f32 %v621_v50, %v168_v29 }
  0x81   :  { %v120_v30 = vpop.permute.xlu1 %119  ;;  %v160_v31 = vpop.permute.xlu0 %159 }
  0x82   :  { %v133_v52 = vmul.f32 %v615_v43, %v120_v30  ;;  %v182_v12 = vmul.f32 %v621_v50, %v160_v31 }
  0x85   :  { %v608_v32 = vpop.permute.xlu0 %155 }
  0x86   :  { %v172_v33 = vpop.permute.xlu1 %171 }
  0x87   :  { %v185_v59 = vmul.f32 %v621_v50, %v172_v33 }
  0x8a   :  { %v100_v35 = vpop.permute.xlu0 %99 }
  0x8b   :  { %v61_v37 = vpop.permute.xlu1 %60  ;;  %v128_v28 = vmul.f32 %v615_v43, %v100_v35 }
  0x8c   :  { %v86_v9 = vmul.f32 %v617_v45, %v61_v37 }
  0x8e   :  { %v610_v38 = vpop.permute.xlu0 %95 }
  0x8f   :  { %v127_v40 = vmul.f32 %v615_v43, %v610_v38 }
  0x90   :  { %v108_v42 = vpop.permute.xlu1 %107 }
  0x91   :  { %v130_v8 = vmul.f32 %v615_v43, %v108_v42 }
  0x93   :  { %v71_v46 = vpop.permute.xlu0 %70  ;;  %v138_v13 = vadd.f32 %v130_v8, %v86_v9 }
  0x94   :  { %v112_v47 = vpop.permute.xlu1 %111  ;;  %v88_v48 = vmul.f32 %v617_v45, %v71_v46 }
  0x95   :  { %v131_v14 = vmul.f32 %v615_v43, %v112_v47  ;;  %v190_v18 = vadd.f32 %v182_v12, %v138_v13  ;;  %v181_v47 = vmul.f32 %v621_v50, %v608_v32 }
  0x96   :  { %v140_v55 = vadd.f32 %v132_v49, %v88_v48 }
  0x97   :  { %v76_v51 = vpop.permute.xlu0 %75 }
  0x98   :  { %v89_v53 = vmul.f32 %v617_v45, %v76_v51  ;;  %v192_v60 = vadd.f32 %v184_v54, %v140_v55 }
  0x99   :  { %v164_v56 = vpop.permute.xlu1 %163 }
  0x9a   :  { %v141_v57 = vadd.f32 %v133_v52, %v89_v53  ;;  %v183_v17 = vmul.f32 %v621_v50, %v164_v56 }
  0x9b   :  { %v66_v58 = vpop.permute.xlu0 %65 }
  0x9c   :  { %v193_v62 = vadd.f32 %v185_v59, %v141_v57  ;;  %v87_v10 = vmul.f32 %v617_v45, %v66_v58 }
  0x9e   :  { %v235_v61 = vpop.permute.xlu1 %234  ;;  %v139_v15 = vadd.f32 %v131_v14, %v87_v10 }
  0x9f   :  { %v248_v63 = vadd.f32 %v235_v61, %v192_v60  ;;  %v240_v0 = vpop.permute.xlu0 %239 }
  0xa0   :  { %v249_v1 = vadd.f32 %v240_v0, %v193_v62  ;;  %v191_v20 = vadd.f32 %v183_v17, %v139_v15 }
  0xa1   :  { %v256_v2 = vmax.f32 %v248_v63, 0.0 }
  0xa2   :  { %v257_v3 = vmax.f32 %v249_v1, 0.0  ;;  %v51_v4 = vpop.permute.xlu1 %50 }
  0xa3   :  { %v84_v29 = vmul.f32 %v617_v45, %v51_v4  ;;  %v41_v30 = vpop.permute.xlu0 %40 }
  0xa4   :  { %v265_v5 = vpack.c.bf16 %v257_v3, %v256_v2  ;;  %v82_v51 = vmul.f32 %v617_v45, %v41_v30 }
  0xa5   :  { %v136_v36 = vadd.f32 %v128_v28, %v84_v29 }
  0xa6   :  { %v56_v6 = vpop.permute.xlu1 %55  ;;  %426 = vmatprep.subr.bf16.mxu0 %v265_v5 }
  0xa7   :  { %427 = vmatpush3.bf16.msra.mxu0 %v265_v5  ;;  %v85_v37 = vmul.f32 %v617_v45, %v56_v6  ;;  %v215_v35 = vpop.permute.xlu0 %214 }
  0xab   :  { %v104_v7 = vpop.permute.xlu1 %103  ;;  %v210_v58 = vpop.permute.xlu0 %209 }
  0xac   :  { %v129_v31 = vmul.f32 %v615_v43, %v104_v7 }
  0xae   :  { %v137_v41 = vadd.f32 %v129_v31, %v85_v37 }
  0xaf   :  { %v278_v3 = vpop.permute.xlu0 %277 }
  0xb0   :  { %v152_v11 = vpop.permute.xlu1 %151  ;;  %v189_v55 = vadd.f32 %v181_v47, %v137_v41 }
  0xb1   :  { %v180_v33 = vmul.f32 %v621_v50, %v152_v11 }
  0xb3   :  { %v188_v42 = vadd.f32 %v180_v33, %v136_v36  ;;  %v288_v6 = vpop.permute.xlu0 %287  ;;  %v398_v36 = vstv %s663_s6 }
  0xb5   :  { %v225_v16 = vpop.permute.xlu1 %224  ;;  %v244_v52 = vadd.f32 %v215_v35, %v188_v42 }
  0xb6   :  { %v246_v19 = vadd.f32 %v225_v16, %v190_v18 }
  0xb7   :  { %v252_v60 = vmax.f32 %v244_v52, 0.0  ;;  %v372_v16 = vpop.permute.xlu0 %371 }
  0xb8   :  { %v254_v23 = vmax.f32 %v246_v19, 0.0 }
  0xb9   :  { %v230_v21 = vpop.permute.xlu1 %229 }
  0xba   :  { %v247_v22 = vadd.f32 %v230_v21, %v191_v20 }
  0xbc   :  { %v255_v24 = vmax.f32 %v247_v22, 0.0 }
  0xbd   :  { %v46_v25 = vpop.permute.xlu1 %45 }
  0xbe   :  { %v264_v26 = vpack.c.bf16 %v255_v24, %v254_v23  ;;  %v83_v39 = vmul.f32 %v617_v45, %v46_v25  ;;  %v382_v25 = vpop.permute.xlu0 %381 }
  0xc0   :  { %428 = vmatprep.subr.bf16.mxu0 %v264_v26  ;;  %v135_v48 = vadd.f32 %v127_v40, %v83_v39 }
  0xc1   :  { %429 = vmatpush3.bf16.msra.mxu0 %v264_v26 }
  0xc2   :  { %v92_v27 = vpop.permute.xlu1 %91 }
  0xc3   :  { %v126_v49 = vmul.f32 %v615_v43, %v92_v27 }
  0xc5   :  { %v134_v56 = vadd.f32 %v126_v49, %v82_v51 }
  0xc7   :  { %v144_v34 = vpop.permute.xlu1 %143 }
  0xc8   :  { %v178_v53 = vmul.f32 %v621_v50, %v144_v34 }
  0xca   :  { %v186_v62 = vadd.f32 %v178_v53, %v134_v56 }
  0xcb   :  { %v148_v44 = vpop.permute.xlu1 %147 }
  0xcc   :  { %v179_v46 = vmul.f32 %v621_v50, %v148_v44  ;;  %v458_v50 = vld [vmem:[%s660_s3 + $0x8] sm:$0xff]  }
  0xce   :  { %v187_v54 = vadd.f32 %v179_v46, %v135_v48 }
  0xd0   :  { %v220_v38 = vpop.permute.xlu1 %219  ;;  %v243_v59 = vadd.f32 %v210_v58, %v187_v54 }
  0xd1   :  { %v245_v57 = vadd.f32 %v220_v38, %v189_v55 }
  0xd2   :  { %v251_v43 = vmax.f32 %v243_v59, 0.0 }
  0xd3   :  { %v253_v61 = vmax.f32 %v245_v57, 0.0 }
  0xd4   :  { %v205_v63 = vpop.permute.xlu1 %204 }
  0xd5   :  { %v263_v32 = vpack.c.bf16 %v253_v61, %v252_v60  ;;  %v242_v0 = vadd.f32 %v205_v63, %v186_v62 }
  0xd7   :  { %v250_v1 = vmax.f32 %v242_v0, 0.0  ;;  %430 = vmatprep.subr.bf16.mxu0 %v263_v32 }
  0xd8   :  { %431 = vmatpush3.bf16.msra.mxu0 %v263_v32  ;;  %v273_v2 = vpop.permute.xlu1 %272 }
  0xd9   :  { %v262_v45 = vpack.c.bf16 %v251_v43, %v250_v1 }
  0xdb   :  { %432 = vmatprep.subr.bf16.mxu0 %v262_v45 }
  0xdc   :  { %433 = vmatpush3.bf16.msra.mxu0 %v262_v45  ;;  %v283_v4 = vpop.permute.xlu1 %282 }
  0xdf   :  { %435 = vmatmul.mubr.msk.bf16.vlgmr.msra.gmra.mxu0 %vm300_vm0, %v458_v50 }
  0xe0   :  { %v367_v11 = vpop.permute.xlu1 %366 }
  0xe4   :  { %v377_v22 = vpop.permute.xlu1 %376 }
 0x19f   :  { %v436_v5 = vpop.f32.mrf.mxu0 }
 0x1a0   :  { %v350_v10 = vadd.f32 %v436_v5, %v283_v4 }
 0x1a1   :  { %v341_v7 = vpop.f32.mrf.mxu0 }
 0x1a2   :  { %v342_v8 = vadd.f32 %v341_v7, %v273_v2  ;;  %v358_v17 = vmax.f32 %v350_v10, 0.0 }
 0x1a3   :  { %v437_v9 = vpop.f32.mrf.mxu0 }
 0x1a4   :  { %v356_v13 = vmax.f32 %v342_v8, 0.0  ;;  %v353_v14 = vadd.f32 %v437_v9, %v288_v6  ;;  %v386_v23 = vmul.f32 %v377_v22, %v358_v17 }
 0x1a5   :  { %v344_v12 = vpop.f32.mrf.mxu0 }
 0x1a6   :  { %v345_v15 = vadd.f32 %v344_v12, %v278_v3  ;;  %v384_v19 = vmul.f32 %v367_v11, %v356_v13  ;;  %v359_v20 = vmax.f32 %v353_v14, 0.0 }
 0x1a8   :  { %v357_v18 = vmax.f32 %v345_v15, 0.0  ;;  %v387_v26 = vmul.f32 %v382_v25, %v359_v20 }
 0x1aa   :  { %v385_v21 = vmul.f32 %v372_v16, %v357_v18 }
 0x1ac   :  { %v388_v24 = vadd.f32 %v385_v21, %v384_v19 }
 0x1ae   :  { %v389_v27 = vadd.f32 %v388_v24, %v386_v23 }
 0x1b0   :  { %v390_v28 = vadd.f32 %v389_v27, %v387_v26 }
 0x1b2   :  { %v391_v29 = vrot.slane %v390_v28, 4 }
 0x1b4   :  { %v392_v30 = vadd.f32 %v391_v29, %v390_v28 }
 0x1b6   :  { %v393_v31 = vrot.slane %v392_v30, 2 }
 0x1b8   :  { %v394_v33 = vadd.f32 %v393_v31, %v392_v30 }
 0x1ba   :  { %v395_v34 = vrot.slane %v394_v33, 1 }
 0x1bc   :  { %v396_v37 = vadd.f32 %v395_v34, %v394_v33 }
 0x1be   :  { %v399_v39 = vadd.f32 %v398_v36, %v396_v37 }
 0x1c0   :  { %459 = vtanh.f32 %v399_v39 }
 0x1cd   :  { %v460_v40 = vpop.eup %459 }
 0x1ce   :  { %401 = vst [vmem:[#allocation3] sm:$0x1] %v460_v40 }
 0x1cf   :  { %472 = shalt.err (!%p469_p4)
}
 0x1d0   :  { %411 = dma.vmem_to_hbm [thread:$0]  %s409_s28, 16, %s664_s7, [#allocation4]  }
 0x1d1   :  { %481 = dma.done.wait [#allocation4], 16  }
 0x1d2   :  { %482 = vsyncadd [#allocation4], 4294967280 }
 0x1d3   :  { %415 = vsyncpa [#allocation4], 1 }

</bundles_post_ra>
